<compile_context>
chip_gen: v5e
topology: v5e:2x2
jax: 0.10.0
libtpu: 0.0.40
codegen_flags: <defaults>
</compile_context>

<pallas_src>
import functools

import jax
import jax.numpy as jnp
from jax.experimental import pallas as pl
from jax.experimental.pallas import tpu as pltpu


_LANE = 128
_SUBLANE = 8
_DMA_SLOTS = 16                     # outstanding row DMAs in the HBM-gather path
_MAX_TOKENS_PER_CALL = 64 * 1024    # keep the scalar-prefetched ids well inside SMEM


def _vmem_capacity_bytes():
    """Per-core VMEM capacity; conservative fallback if the query is unavailable."""
    try:
        return min(int(pltpu.get_tpu_info().vmem_capacity_bytes), 128 << 20)
    except Exception:
        return 64 << 20             # v7x per-TensorCore VMEM (most restrictive)


def _round_up(x, m):
    return (x + m - 1) // m * m


# ----------------------------------------------------------------------------
# Path A kernel: VMEM-resident table, blocked in-VMEM gather (8 rows / slab).
# ----------------------------------------------------------------------------
def _vmem_gather_kernel(ids_ref, w_ref, o_ref):
    """ids_ref: (n_pad,) int32 in SMEM (scalar prefetch)
       w_ref:   (V, E_pad) table, resident in VMEM (constant block index)
       o_ref:   (TB, E_pad) output block, TB % 8 == 0."""
    tb = o_ref.shape[0]
    base = pl.program_id(0) * tb
    n_slabs = tb // _SUBLANE

    def body(s, carry):
        t0 = pl.multiple_of(s * _SUBLANE, _SUBLANE)
        # 8 dynamic single-row reads assembled into one (8, E) slab so the
        # store is a full unmasked (8, 128k) vst instead of 8 masked 1-sublane
        # stores (the single store slot is what saturates first here).
        rows = [w_ref[pl.ds(ids_ref[base + t0 + j], 1), :]
                for j in range(_SUBLANE)]
        o_ref[pl.ds(t0, _SUBLANE), :] = jnp.concatenate(rows, axis=0)
        return carry

    jax.lax.fori_loop(0, n_slabs, body, 0, unroll=min(8, n_slabs))


# ----------------------------------------------------------------------------
# Path B kernel: HBM-resident table, blocked manual DMA gather.
# ----------------------------------------------------------------------------
def _hbm_gather_kernel(ids_ref, w_hbm, o_ref, buf, sems, *, n_slots):
    """ids_ref: (n_pad,) int32 in SMEM (scalar prefetch)
       w_hbm:   (V, E) table left in HBM (memory_space=pl.ANY)
       o_ref:   (TB, E) output block
       buf:     (TB, E) VMEM scratch slab
       sems:    DMA semaphore array with n_slots entries (outstanding depth)."""
    tb = o_ref.shape[0]
    base = pl.program_id(0) * tb

    def _copy(t):
        row = ids_ref[base + t]
        return pltpu.make_async_copy(
            w_hbm.at[pl.ds(row, 1), :],
            buf.at[pl.ds(t, 1), :],
            sems.at[t % n_slots],
        )

    # Prime up to n_slots outstanding row DMAs.
    def _prime(t, c):
        _copy(t).start()
        return c

    jax.lax.fori_loop(0, min(n_slots, tb), _prime, 0)

    # Steady state: wait for row t, immediately refill its slot with row t+n_slots.
    def _drain(t, c):
        _copy(t).wait()

        @pl.when(t + n_slots < tb)
        def _():
            _copy(t + n_slots).start()

        return c

    jax.lax.fori_loop(0, tb, _drain, 0)

    # One large lane-dense writeback of the whole block.
    o_ref[...] = buf[...]


# ----------------------------------------------------------------------------
# pallas_call wrappers.
# ----------------------------------------------------------------------------
def _lookup_block_vmem(ids, weight_p, tb, e_pad, vmem_cap):
    n_pad = ids.shape[0]
    v = weight_p.shape[0]
    table_bytes = v * e_pad * 4
    # The constant-block-index table is only copied once, but the BlockSpec
    # machinery still allocates a double buffer for it (2x).
    # TODO(synk): use pipeline_mode=pl.Buffered(1) on the table BlockSpec once
    # single-buffered specs are universally supported; that halves its footprint.
    vmem_bytes = int(2 * table_bytes + 2 * tb * e_pad * 4 + (4 << 20))
    vmem_bytes = min(max(vmem_bytes, 32 << 20), vmem_cap)
    cost = pl.CostEstimate(
        flops=0, transcendentals=0,
        bytes_accessed=int(table_bytes + n_pad * e_pad * 4 + n_pad * 4))
    return pl.pallas_call(
        _vmem_gather_kernel,
        out_shape=jax.ShapeDtypeStruct((n_pad, e_pad), weight_p.dtype),
        grid_spec=pltpu.PrefetchScalarGridSpec(
            num_scalar_prefetch=1,
            grid=(n_pad // tb,),
            in_specs=[
                # Full table, constant block index -> DMA'd into VMEM once.
                pl.BlockSpec((v, e_pad), lambda i, ids_ref: (0, 0)),
            ],
            out_specs=pl.BlockSpec((tb, e_pad), lambda i, ids_ref: (i, 0)),
        ),
        compiler_params=pltpu.CompilerParams(
            dimension_semantics=("parallel",),
            vmem_limit_bytes=vmem_bytes),
        cost_estimate=cost,
    )(ids, weight_p)


def _lookup_block_hbm(ids, weight, tb, vmem_cap):
    n_pad = ids.shape[0]
    v, e = weight.shape
    buf_bytes = tb * e * 4
    vmem_bytes = min(max(int(3 * buf_bytes + (4 << 20)), 32 << 20), vmem_cap)
    cost = pl.CostEstimate(
        flops=0, transcendentals=0,
        bytes_accessed=int(2 * n_pad * e * 4 + n_pad * 4))
    kernel = functools.partial(_hbm_gather_kernel, n_slots=_DMA_SLOTS)
    return pl.pallas_call(
        kernel,
        out_shape=jax.ShapeDtypeStruct((n_pad, e), weight.dtype),
        grid_spec=pltpu.PrefetchScalarGridSpec(
            num_scalar_prefetch=1,
            grid=(n_pad // tb,),
            in_specs=[pl.BlockSpec(memory_space=pl.ANY)],   # table stays in HBM
            out_specs=pl.BlockSpec((tb, e), lambda i, ids_ref: (i, 0)),
            scratch_shapes=[
                pltpu.VMEM((tb, e), weight.dtype),
                pltpu.SemaphoreType.DMA((_DMA_SLOTS,)),
            ],
        ),
        compiler_params=pltpu.CompilerParams(
            dimension_semantics=("parallel",),
            vmem_limit_bytes=vmem_bytes),
        cost_estimate=cost,
    )(ids, weight)


def _lookup_chunk(flat, weight, token_block, force_hbm_gather, vmem_cap):
    n = flat.shape[0]
    v, e = weight.shape
    e_pad = _round_up(e, _LANE)
    table_bytes_p = v * e_pad * 4
    out_blk_cap = min(4 << 20, vmem_cap // 16)
    # 2x table (double-buffered spec) + output double-buffer + slack must fit
    # in ~3/4 of per-core VMEM.
    table_max = max(4 << 20,
                    (vmem_cap * 3 // 4 - 2 * out_blk_cap - (2 << 20)) // 2)

    if table_bytes_p <= table_max and not force_hbm_gather:
        # ---- Path A: VMEM-resident table, blocked in-VMEM gather -----------
        rows_cap = max(_SUBLANE,
                       (out_blk_cap // (e_pad * 4)) // _SUBLANE * _SUBLANE)
        tb = max(_SUBLANE, min(token_block, rows_cap, _round_up(n, _SUBLANE)))
        tb = tb // _SUBLANE * _SUBLANE
        n_pad = _round_up(n, tb)
        ids = flat if n_pad == n else jnp.pad(flat, (0, n_pad - n))
        w = weight if e_pad == e else jnp.pad(weight, ((0, 0), (0, e_pad - e)))
        out = _lookup_block_vmem(ids, w, tb, e_pad, vmem_cap)
        if n_pad != n:
            out = out[:n]
        if e_pad != e:
            out = out[:, :e]
        return out
    else:
        # ---- Path B: table stays in HBM; blocked per-row DMA gather --------
        # TODO(synk): lane-pad E here too once the padded table can be cached
        # across calls (per-call padding would re-copy the whole HBM table).
        tb = max(_SUBLANE, min(512, _round_up(n, _SUBLANE)))
        tb = tb // _SUBLANE * _SUBLANE
        n_pad = _round_up(n, tb)
        ids = flat if n_pad == n else jnp.pad(flat, (0, n_pad - n))
        out = _lookup_block_hbm(ids, weight, tb, vmem_cap)
        if n_pad != n:
            out = out[:n]
        return out


@functools.partial(jax.jit, static_argnames=("token_block", "force_hbm_gather"))
def embedding_lookup(indices, weight, token_block=1024, force_hbm_gather=False):
    """indices: int array of any shape; weight: (V, E) float table.
    Returns weight[indices] with shape indices.shape + (E,)."""
    v, e = weight.shape
    orig_shape = indices.shape
    flat = indices.reshape(-1).astype(jnp.int32)
    # PyTorch nn.Embedding raises on out-of-range ids; clamp to stay in-bounds.
    # TODO(synk): surface OOB ids instead of clamping.
    flat = jnp.clip(flat, 0, v - 1)
    n = flat.shape[0]
    vmem_cap = _vmem_capacity_bytes()

    if n <= _MAX_TOKENS_PER_CALL:
        out = _lookup_chunk(flat, weight, token_block, force_hbm_gather, vmem_cap)
    else:
        # Chunk so the scalar-prefetched id array stays comfortably inside SMEM.
        outs = []
        for s in range(0, n, _MAX_TOKENS_PER_CALL):
            outs.append(_lookup_chunk(flat[s:s + _MAX_TOKENS_PER_CALL], weight,
                                      token_block, force_hbm_gather, vmem_cap))
        out = jnp.concatenate(outs, axis=0)

    return out.reshape(*orig_shape, e)


class Word2Vec:
    """JAX/Pallas port of the PyTorch Word2Vec (SGNS) embedding bundler."""

    def __init__(self, vocab_size=512, embedding_size=128, padding_idx=0,
                 key=None):
        self.vocab_size = vocab_size
        self.embedding_size = embedding_size
        if key is None:
            key = jax.random.PRNGKey(0)
        ki, ko = jax.random.split(key)
        lim = 0.5 / embedding_size
        # Row 0 (padding_idx) is zeros; rest uniform(-0.5/E, 0.5/E), matching
        # PyTorch's t.cat([zeros(1,E), FT(V-1,E).uniform_(...)]).
        ivec = jax.random.uniform(ki, (vocab_size - 1, embedding_size),
                                  jnp.float32, minval=-lim, maxval=lim)
        ovec = jax.random.uniform(ko, (vocab_size - 1, embedding_size),
                                  jnp.float32, minval=-lim, maxval=lim)
        zeros = jnp.zeros((1, embedding_size), jnp.float32)
        self.ivectors = jnp.concatenate([zeros, ivec], axis=0)
        self.ovectors = jnp.concatenate([zeros, ovec], axis=0)

    def forward(self, data):
        return self.forward_i(data)

    def forward_i(self, data):
        return embedding_lookup(jnp.asarray(data, jnp.int32), self.ivectors)

    def forward_o(self, data):
        return embedding_lookup(jnp.asarray(data, jnp.int32), self.ovectors)

    __call__ = forward


if __name__ == "__main__":
    key = jax.random.PRNGKey(0)
    k_model, k_data = jax.random.split(key)

    V, E = 512, 128          # small vocab / embedding for the demo
    B, S = 2, 8              # batch of 2 sequences of 8 tokens

    model = Word2Vec(vocab_size=V, embedding_size=E, key=k_model)
    data = jax.random.randint(k_data, (B, S), 0, V, dtype=jnp.int32)

    # Path A: VMEM-resident table gather.
    out = jax.block_until_ready(model(data))
    assert out.shape == (B, S, E), out.shape
    ref_i = model.ivectors[data]
    assert jnp.allclose(out, ref_i, atol=1e-6), "forward_i mismatch vs reference"

    # forward_o uses the same kernel on the other table.
    out_o = jax.block_until_ready(model.forward_o(data))
    ref_o = model.ovectors[data]
    assert jnp.allclose(out_o, ref_o, atol=1e-6), "forward_o mismatch vs reference"

    # Path B: force the blocked HBM DMA-gather path and cross-check it.
    out_hbm = jax.block_until_ready(
        embedding_lookup(data, model.ivectors, force_hbm_gather=True))
    assert out_hbm.shape == (B, S, E)
    assert jnp.allclose(out_hbm, ref_i, atol=1e-6), "DMA-gather path mismatch"

    # padding_idx row must map to zeros.
    pad_out = jax.block_until_ready(model(jnp.zeros((1, 4), jnp.int32)))
    assert jnp.all(pad_out == 0.0)

    # Non-multiple-of-128 embedding dim exercises the lane-padding path.
    model96 = Word2Vec(vocab_size=64, embedding_size=96,
                       key=jax.random.PRNGKey(1))
    data96 = jax.random.randint(jax.random.PRNGKey(2), (3, 5), 0, 64,
                                dtype=jnp.int32)
    out96 = jax.block_until_ready(model96(data96))
    assert out96.shape == (3, 5, 96)
    assert jnp.allclose(out96, model96.ivectors[data96], atol=1e-6), \
        "lane-padded path mismatch"

    print("KERNEL_OK")
</pallas_src>

<mosaic_0001>
module attributes {stable_mosaic.version = 11 : i64} {
  func.func @_vmem_gather_kernel(%arg0: i32, %arg1: memref<16xi32, #tpu.memory_space<smem>>, %arg2: memref<512x128xf32, #tpu.memory_space<vmem>>, %arg3: memref<16x128xf32, #tpu.memory_space<vmem>>) attributes {dimension_semantics = [#tpu.dimension_semantics<parallel>], iteration_bounds = array<i64: 1>, scalar_prefetch = 1 : i64, scratch_operands = 0 : i64, tpu.core_type = #tpu.core_type<tc>, window_params = [{pipeline_mode = #tpu.pipeline_mode<synchronous>, transform_indices = @transform_0, window_bounds = array<i64: 512, 128>}, {transform_indices = @transform_1, window_bounds = array<i64: 16, 128>}]} {
    %c16_i32 = arith.constant 16 : i32
    %0 = arith.muli %arg0, %c16_i32 : i32
    %c0_i32 = arith.constant 0 : i32
    %c8_i32 = arith.constant 8 : i32
    %1 = arith.muli %c0_i32, %c8_i32 : i32
    %2 = tpu.assume_multiple %1, 8 : i32
    %3 = arith.addi %0, %2 : i32
    %c0_i32_0 = arith.constant 0 : i32
    %4 = arith.addi %3, %c0_i32_0 : i32
    %5 = arith.index_cast %4 : i32 to index
    %6 = memref.load %arg1[%5] : memref<16xi32, #tpu.memory_space<smem>>
    %7 = arith.index_cast %6 : i32 to index
    %c0 = arith.constant 0 : index
    %8 = vector.load %arg2[%7, %c0] : memref<512x128xf32, #tpu.memory_space<vmem>>, vector<1x128xf32>
    %9 = arith.addi %0, %2 : i32
    %c1_i32 = arith.constant 1 : i32
    %10 = arith.addi %9, %c1_i32 : i32
    %11 = arith.index_cast %10 : i32 to index
    %12 = memref.load %arg1[%11] : memref<16xi32, #tpu.memory_space<smem>>
    %13 = arith.index_cast %12 : i32 to index
    %c0_1 = arith.constant 0 : index
    %14 = vector.load %arg2[%13, %c0_1] : memref<512x128xf32, #tpu.memory_space<vmem>>, vector<1x128xf32>
    %15 = arith.addi %0, %2 : i32
    %c2_i32 = arith.constant 2 : i32
    %16 = arith.addi %15, %c2_i32 : i32
    %17 = arith.index_cast %16 : i32 to index
    %18 = memref.load %arg1[%17] : memref<16xi32, #tpu.memory_space<smem>>
    %19 = arith.index_cast %18 : i32 to index
    %c0_2 = arith.constant 0 : index
    %20 = vector.load %arg2[%19, %c0_2] : memref<512x128xf32, #tpu.memory_space<vmem>>, vector<1x128xf32>
    %21 = arith.addi %0, %2 : i32
    %c3_i32 = arith.constant 3 : i32
    %22 = arith.addi %21, %c3_i32 : i32
    %23 = arith.index_cast %22 : i32 to index
    %24 = memref.load %arg1[%23] : memref<16xi32, #tpu.memory_space<smem>>
    %25 = arith.index_cast %24 : i32 to index
    %c0_3 = arith.constant 0 : index
    %26 = vector.load %arg2[%25, %c0_3] : memref<512x128xf32, #tpu.memory_space<vmem>>, vector<1x128xf32>
    %27 = arith.addi %0, %2 : i32
    %c4_i32 = arith.constant 4 : i32
    %28 = arith.addi %27, %c4_i32 : i32
    %29 = arith.index_cast %28 : i32 to index
    %30 = memref.load %arg1[%29] : memref<16xi32, #tpu.memory_space<smem>>
    %31 = arith.index_cast %30 : i32 to index
    %c0_4 = arith.constant 0 : index
    %32 = vector.load %arg2[%31, %c0_4] : memref<512x128xf32, #tpu.memory_space<vmem>>, vector<1x128xf32>
    %33 = arith.addi %0, %2 : i32
    %c5_i32 = arith.constant 5 : i32
    %34 = arith.addi %33, %c5_i32 : i32
    %35 = arith.index_cast %34 : i32 to index
    %36 = memref.load %arg1[%35] : memref<16xi32, #tpu.memory_space<smem>>
    %37 = arith.index_cast %36 : i32 to index
    %c0_5 = arith.constant 0 : index
    %38 = vector.load %arg2[%37, %c0_5] : memref<512x128xf32, #tpu.memory_space<vmem>>, vector<1x128xf32>
    %39 = arith.addi %0, %2 : i32
    %c6_i32 = arith.constant 6 : i32
    %40 = arith.addi %39, %c6_i32 : i32
    %41 = arith.index_cast %40 : i32 to index
    %42 = memref.load %arg1[%41] : memref<16xi32, #tpu.memory_space<smem>>
    %43 = arith.index_cast %42 : i32 to index
    %c0_6 = arith.constant 0 : index
    %44 = vector.load %arg2[%43, %c0_6] : memref<512x128xf32, #tpu.memory_space<vmem>>, vector<1x128xf32>
    %45 = arith.addi %0, %2 : i32
    %c7_i32 = arith.constant 7 : i32
    %46 = arith.addi %45, %c7_i32 : i32
    %47 = arith.index_cast %46 : i32 to index
    %48 = memref.load %arg1[%47] : memref<16xi32, #tpu.memory_space<smem>>
    %49 = arith.index_cast %48 : i32 to index
    %c0_7 = arith.constant 0 : index
    %50 = vector.load %arg2[%49, %c0_7] : memref<512x128xf32, #tpu.memory_space<vmem>>, vector<1x128xf32>
    %51 = tpu.concatenate %8, %14, %20, %26, %32, %38, %44, %50 in 0 : vector<1x128xf32>, vector<1x128xf32>, vector<1x128xf32>, vector<1x128xf32>, vector<1x128xf32>, vector<1x128xf32>, vector<1x128xf32>, vector<1x128xf32> -> vector<8x128xf32>
    %52 = arith.index_cast %2 : i32 to index
    %c0_8 = arith.constant 0 : index
    %53 = vector.load %arg3[%52, %c0_8] : memref<16x128xf32, #tpu.memory_space<vmem>>, vector<8x128xf32>
    tpu.vector_store %arg3[%52, %c0_8], %51 {strides = array<i32>} : memref<16x128xf32, #tpu.memory_space<vmem>>, vector<8x128xf32>,
    %c1_i32_9 = arith.constant 1 : i32
    %c8_i32_10 = arith.constant 8 : i32
    %54 = arith.muli %c1_i32_9, %c8_i32_10 : i32
    %55 = tpu.assume_multiple %54, 8 : i32
    %56 = arith.addi %0, %55 : i32
    %c0_i32_11 = arith.constant 0 : i32
    %57 = arith.addi %56, %c0_i32_11 : i32
    %58 = arith.index_cast %57 : i32 to index
    %59 = memref.load %arg1[%58] : memref<16xi32, #tpu.memory_space<smem>>
    %60 = arith.index_cast %59 : i32 to index
    %c0_12 = arith.constant 0 : index
    %61 = vector.load %arg2[%60, %c0_12] : memref<512x128xf32, #tpu.memory_space<vmem>>, vector<1x128xf32>
    %62 = arith.addi %0, %55 : i32
    %c1_i32_13 = arith.constant 1 : i32
    %63 = arith.addi %62, %c1_i32_13 : i32
    %64 = arith.index_cast %63 : i32 to index
    %65 = memref.load %arg1[%64] : memref<16xi32, #tpu.memory_space<smem>>
    %66 = arith.index_cast %65 : i32 to index
    %c0_14 = arith.constant 0 : index
    %67 = vector.load %arg2[%66, %c0_14] : memref<512x128xf32, #tpu.memory_space<vmem>>, vector<1x128xf32>
    %68 = arith.addi %0, %55 : i32
    %c2_i32_15 = arith.constant 2 : i32
    %69 = arith.addi %68, %c2_i32_15 : i32
    %70 = arith.index_cast %69 : i32 to index
    %71 = memref.load %arg1[%70] : memref<16xi32, #tpu.memory_space<smem>>
    %72 = arith.index_cast %71 : i32 to index
    %c0_16 = arith.constant 0 : index
    %73 = vector.load %arg2[%72, %c0_16] : memref<512x128xf32, #tpu.memory_space<vmem>>, vector<1x128xf32>
    %74 = arith.addi %0, %55 : i32
    %c3_i32_17 = arith.constant 3 : i32
    %75 = arith.addi %74, %c3_i32_17 : i32
    %76 = arith.index_cast %75 : i32 to index
    %77 = memref.load %arg1[%76] : memref<16xi32, #tpu.memory_space<smem>>
    %78 = arith.index_cast %77 : i32 to index
    %c0_18 = arith.constant 0 : index
    %79 = vector.load %arg2[%78, %c0_18] : memref<512x128xf32, #tpu.memory_space<vmem>>, vector<1x128xf32>
    %80 = arith.addi %0, %55 : i32
    %c4_i32_19 = arith.constant 4 : i32
    %81 = arith.addi %80, %c4_i32_19 : i32
    %82 = arith.index_cast %81 : i32 to index
    %83 = memref.load %arg1[%82] : memref<16xi32, #tpu.memory_space<smem>>
    %84 = arith.index_cast %83 : i32 to index
    %c0_20 = arith.constant 0 : index
    %85 = vector.load %arg2[%84, %c0_20] : memref<512x128xf32, #tpu.memory_space<vmem>>, vector<1x128xf32>
    %86 = arith.addi %0, %55 : i32
    %c5_i32_21 = arith.constant 5 : i32
    %87 = arith.addi %86, %c5_i32_21 : i32
    %88 = arith.index_cast %87 : i32 to index
    %89 = memref.load %arg1[%88] : memref<16xi32, #tpu.memory_space<smem>>
    %90 = arith.index_cast %89 : i32 to index
    %c0_22 = arith.constant 0 : index
    %91 = vector.load %arg2[%90, %c0_22] : memref<512x128xf32, #tpu.memory_space<vmem>>, vector<1x128xf32>
    %92 = arith.addi %0, %55 : i32
    %c6_i32_23 = arith.constant 6 : i32
    %93 = arith.addi %92, %c6_i32_23 : i32
    %94 = arith.index_cast %93 : i32 to index
    %95 = memref.load %arg1[%94] : memref<16xi32, #tpu.memory_space<smem>>
    %96 = arith.index_cast %95 : i32 to index
    %c0_24 = arith.constant 0 : index
    %97 = vector.load %arg2[%96, %c0_24] : memref<512x128xf32, #tpu.memory_space<vmem>>, vector<1x128xf32>
    %98 = arith.addi %0, %55 : i32
    %c7_i32_25 = arith.constant 7 : i32
    %99 = arith.addi %98, %c7_i32_25 : i32
    %100 = arith.index_cast %99 : i32 to index
    %101 = memref.load %arg1[%100] : memref<16xi32, #tpu.memory_space<smem>>
    %102 = arith.index_cast %101 : i32 to index
    %c0_26 = arith.constant 0 : index
    %103 = vector.load %arg2[%102, %c0_26] : memref<512x128xf32, #tpu.memory_space<vmem>>, vector<1x128xf32>
    %104 = tpu.concatenate %61, %67, %73, %79, %85, %91, %97, %103 in 0 : vector<1x128xf32>, vector<1x128xf32>, vector<1x128xf32>, vector<1x128xf32>, vector<1x128xf32>, vector<1x128xf32>, vector<1x128xf32>, vector<1x128xf32> -> vector<8x128xf32>
    %105 = arith.index_cast %55 : i32 to index
    %c0_27 = arith.constant 0 : index
    %106 = vector.load %arg3[%105, %c0_27] : memref<16x128xf32, #tpu.memory_space<vmem>>, vector<8x128xf32>
    tpu.vector_store %arg3[%105, %c0_27], %104 {strides = array<i32>} : memref<16x128xf32, #tpu.memory_space<vmem>>, vector<8x128xf32>,
    %c2_i32_28 = arith.constant 2 : i32
    return
  }
  func.func @transform_0(%arg0: i32, %arg1: memref<16xi32, #tpu.memory_space<smem>>) -> (i32, i32) {
    %c0_i32 = arith.constant 0 : i32
    %c0_i32_0 = arith.constant 0 : i32
    %c0_i32_1 = arith.constant 0 : i32
    return %c0_i32, %c0_i32_0 : i32, i32
  }
  func.func @transform_1(%arg0: i32, %arg1: memref<16xi32, #tpu.memory_space<smem>>) -> (i32, i32) {
    %c0_i32 = arith.constant 0 : i32
    %c0_i32_0 = arith.constant 0 : i32
    return %arg0, %c0_i32 : i32, i32
  }
}

</mosaic_0001>

<bundles_post_ra>
// kernel: embedding_lookup.1
= control target key start
LH: loop header
LB: loop body
LE: loop exit
PB: predicated region body
PF: predicated region fallthrough
CT: control target
= control target key end

     0   :  { %s286_s12 = smov [#allocation3]   ;;  %s359_s0 = inlined_call_operand.vmem [shape: s32[16], index: 0, kind: input, shape index: {}]   ;;  %s360_s1 = inlined_call_operand.hbm [shape: f32[512,128], index: 1, kind: input, shape index: {}]   ;;  %s361_s2 = inlined_call_operand.hbm [shape: f32[16,128], index: 2, kind: output, shape index: {}]  }
   0x1   :  { %s8_s11 = sshll.u32 %s359_s0, 4  ;;  %s9_s11 = int_to_ptr.vmem [resolvable:$true] %s8_s11 }
   0x2   :  { %11 = dma.vmem_to_smem %s9_s11, 16, %s286_s12, [#allocation2] }
   0x3   :  { %280 = dma.done.wait [#allocation2], 16 }
   0x4   :  { %281 = vsyncadd [#allocation2], 4294967280 }
   0x5   :  { %14 = sfence }
   0x6   :  { %15 = vsyncpa [#allocation5], 0 }
   0x7   :  { %16 = vsyncpa [#allocation6], 0  ;;  %s21_s15 = sshll.u32 %s360_s1, 4  ;;  %s287_s16 = smov [#allocation4]   ;;  %s22_s15 = int_to_ptr.hbm [resolvable:$true] %s21_s15 }
   0x8   :  { %s23_s17 = sshll.u32 %s287_s16, 4  ;;  %s288_s18 = smov 128   ;;  %s24_s17 = int_to_ptr.vmem [resolvable:$true] %s23_s17 }
   0x9   :  { %s289_s19 = smov 8  }
   0xa   :  { %29 = dma.hbm_to_vmem [thread:$0]  %s22_s15, 8192, %s24_s17, [#allocation5], %s288_s18, %s288_s18, %s289_s19  }
   0xb   :  { %282 = dma.done.wait [#allocation5], 8192  }
   0xc   :  { %283 = vsyncadd [#allocation5], 4294959104  ;;  %s36_s0 = sld [smem:[#allocation3]]  ;;  %vm88_vm0 = vcmask 1040384   ;;  %vm90_vm1 = vcmask 1041408   ;;  %vm92_vm2 = vcmask 1042432  }
   0xd   :  { %s200_s20 = sld [smem:[#allocation3 + $0x1]]  ;;  %vm94_vm3 = vcmask 1043456   ;;  %vm96_vm4 = vcmask 1044480   ;;  %vm98_vm5 = vcmask 1045504   ;;  %vm100_vm6 = vcmask 1046528  }
   0xe   :  { %s201_s21 = sld [smem:[#allocation3 + $0x2]] }
   0xf   :  { %s202_s22 = sld [smem:[#allocation3 + $0x3]] }
  0x10   :  { %s203_s23 = sld [smem:[#allocation3 + $0x4]] }
  0x11   :  { %s315_s24 = sld [smem:[#allocation3 + $0x5]] }
  0x12   :  { %s317_s1 = sld [smem:[#allocation3 + $0x6]]  ;;  %s37_s25 = scalar_lea.vmem [#allocation4], %s36_s0 }
  0x13   :  { %v38_v0 = vld [vmem:[%s37_s25] sm:$0x1]  ;;  %s319_s26 = sld [smem:[#allocation3 + $0x7]]  ;;  %s41_s27 = scalar_lea.vmem [#allocation4], %s200_s20 }
  0x14   :  { %v42_v1 = vld [vmem:[%s41_s27] sm:$0x1]  ;;  %s321_s28 = sld [smem:[#allocation3 + $0x8]]  ;;  %s45_s29 = scalar_lea.vmem [#allocation4], %s201_s21 }
  0x15   :  { %v46_v2 = vld [vmem:[%s45_s29] sm:$0x1]  ;;  %v68_v3 = vrot.slane %v42_v1, 7  ;;  %s323_s30 = sld [smem:[#allocation3 + $0x9]]  ;;  %s49_s3 = scalar_lea.vmem [#allocation4], %s202_s22 }
  0x16   :  { %v50_v4 = vld [vmem:[%s49_s3] sm:$0x1]  ;;  %v71_v5 = vrot.slane %v46_v2, 6  ;;  %s325_s4 = sld [smem:[#allocation3 + $0xa]]  ;;  %s53_s5 = scalar_lea.vmem [#allocation4], %s203_s23 }
  0x17   :  { %v54_v6 = vld [vmem:[%s53_s5] sm:$0x1]  ;;  %v74_v7 = vrot.slane %v50_v4, 5  ;;  %v89_v8 = vsel %vm88_vm0, %v38_v0, %v68_v3  ;;  %s328_s6 = sld [smem:[#allocation3 + $0xb]]  ;;  %s57_s7 = scalar_lea.vmem [#allocation4], %s315_s24 }
  0x18   :  { %v58_v9 = vld [vmem:[%s57_s7] sm:$0x1]  ;;  %v77_v10 = vrot.slane %v54_v6, 4  ;;  %v91_v11 = vsel %vm90_vm1, %v89_v8, %v71_v5  ;;  %s211_s8 = sld [smem:[#allocation3 + $0xc]]  ;;  %s61_s9 = scalar_lea.vmem [#allocation4], %s317_s1 }
  0x19   :  { %v62_v12 = vld [vmem:[%s61_s9] sm:$0x1]  ;;  %v80_v13 = vrot.slane %v58_v9, 3  ;;  %v93_v14 = vsel %vm92_vm2, %v91_v11, %v74_v7  ;;  %s212_s10 = sld [smem:[#allocation3 + $0xd]]  ;;  %s65_s11 = scalar_lea.vmem [#allocation4], %s319_s26 }
  0x1a   :  { %v66_v15 = vld [vmem:[%s65_s11] sm:$0x1]  ;;  %v83_v16 = vrot.slane %v62_v12, 2  ;;  %v95_v17 = vsel %vm94_vm3, %v93_v14, %v77_v10  ;;  %s213_s12 = sld [smem:[#allocation3 + $0xe]]  ;;  %s105_s14 = scalar_lea.vmem [#allocation4], %s321_s28 }
  0x1b   :  { %v86_v18 = vrot.slane %v66_v15, 1  ;;  %v97_v19 = vsel %vm96_vm4, %v95_v17, %v80_v13  ;;  %s337_s13 = sld [smem:[#allocation3 + $0xf]]  ;;  %v106_v21 = vld [vmem:[%s105_s14] sm:$0x1]  ;;  %s109_s15 = scalar_lea.vmem [#allocation4], %s323_s30 }
  0x1c   :  { %v99_v20 = vsel %vm98_vm5, %v97_v19, %v83_v16  ;;  %v110_v22 = vld [vmem:[%s109_s15] sm:$0x1]  ;;  %s113_s16 = scalar_lea.vmem [#allocation4], %s325_s4  ;;  %s290_s21 = smov [#allocation7]  }
  0x1d   :  { %v101_v23 = vsel %vm100_vm6, %v99_v20, %v86_v18  ;;  %v114_v24 = vld [vmem:[%s113_s16] sm:$0x1]  ;;  %v136_v25 = vrot.slane %v110_v22, 7  ;;  %s117_s17 = scalar_lea.vmem [#allocation4], %s328_s6  ;;  %s169_s22 = sshll.u32 %s290_s21, 4  ;;  %s170_s22 = int_to_ptr.vmem [resolvable:$true] %s169_s22 }
  0x1e   :  { %102 = vst [vmem:[#allocation7] sm:$0xff] %v101_v23  ;;  %v118_v26 = vld [vmem:[%s117_s17] sm:$0x1]  ;;  %v139_v27 = vrot.slane %v114_v24, 6  ;;  %s121_s0 = scalar_lea.vmem [#allocation4], %s211_s8  ;;  %s171_s25 = sshll.u32 %s361_s2, 4  ;;  %s172_s25 = int_to_ptr.hbm [resolvable:$true] %s171_s25 }
  0x1f   :  { %v122_v28 = vld [vmem:[%s121_s0] sm:$0x1]  ;;  %v142_v29 = vrot.slane %v118_v26, 5  ;;  %v156_v30 = vsel %vm88_vm0, %v106_v21, %v136_v25  ;;  %s125_s20 = scalar_lea.vmem [#allocation4], %s212_s10 }
  0x20   :  { %v126_v31 = vld [vmem:[%s125_s20] sm:$0x1]  ;;  %v145_v32 = vrot.slane %v122_v28, 4  ;;  %v157_v33 = vsel %vm90_vm1, %v156_v30, %v139_v27  ;;  %s129_s23 = scalar_lea.vmem [#allocation4], %s213_s12 }
  0x21   :  { %v130_v34 = vld [vmem:[%s129_s23] sm:$0x1]  ;;  %v148_v35 = vrot.slane %v126_v31, 3  ;;  %v158_v36 = vsel %vm92_vm2, %v157_v33, %v142_v29  ;;  %s133_s26 = scalar_lea.vmem [#allocation4], %s337_s13 }
  0x22   :  { %v134_v37 = vld [vmem:[%s133_s26] sm:$0x1]  ;;  %v151_v38 = vrot.slane %v130_v34, 2  ;;  %v159_v39 = vsel %vm94_vm3, %v158_v36, %v145_v32 }
  0x23   :  { %v154_v40 = vrot.slane %v134_v37, 1  ;;  %v160_v41 = vsel %vm96_vm4, %v159_v39, %v148_v35 }
  0x24   :  { %v161_v42 = vsel %vm98_vm5, %v160_v41, %v151_v38 }
  0x25   :  { %v162_v43 = vsel %vm100_vm6, %v161_v42, %v154_v40 }
  0x26   :  { %164 = vst [vmem:[#allocation7 + $0x8] sm:$0xff] %v162_v43 }
  0x27   :  { %177 = dma.vmem_to_hbm [thread:$0]  %s170_s22, 256, %s172_s25, [#allocation6], %s288_s18, %s288_s18, %s289_s19  }
  0x28   :  { %284 = dma.done.wait [#allocation6], 256  }
  0x29   :  { %285 = vsyncadd [#allocation6], 4294967040 }
  0x2a   :  { %182 = vsyncpa [#allocation5], 1 }
  0x2b   :  { %183 = vsyncpa [#allocation6], 1 }

</bundles_post_ra>
